<compile_context>
chip_gen: v5e
topology: v5e:2x2
jax: 0.10.0
libtpu: 0.0.40
codegen_flags: <defaults>
</compile_context>

<pallas_src>
import functools

import jax
import jax.numpy as jnp
from jax.experimental import pallas as pl
from jax.experimental.pallas import tpu as pltpu


def _round_up(x, m):
    return ((x + m - 1) // m) * m


def _label_smoothing_kernel(pred_ref, tgt_ref, out_ref, *, eps, ignore_index,
                            n_rows):
    t, c = pred_ref.shape

    # Row-validity mask for the ragged last tile (pred is NOT padded in HBM).
    base = pl.program_id(0) * t
    row = jax.lax.broadcasted_iota(jnp.int32, (t, 1), 0)
    valid = (base + row) < n_rows                                  # (T,1) bool

    # Zero invalid rows BEFORE max/exp: stale-buffer garbage must never reach
    # the transcendental path (0 * NaN = NaN would defeat the later mask).
    x = pred_ref[...]                                              # (T,C) in dtype
    x = jnp.where(valid, x, jnp.zeros_like(x))

    tgt = tgt_ref[...]                                             # (T,1) int32

    # Pass 1: row max (stays in input dtype; exact for max).
    m = jnp.max(x, axis=1, keepdims=True).astype(jnp.float32)      # (T,1)

    # Pass 2: exp-sum with f32 accumulation (upcast fused into the expression,
    # no named (T,C) f32 copy).
    sum_exp = jnp.sum(jnp.exp(x.astype(jnp.float32) - m), axis=1, keepdims=True)
    z = m + jnp.log(sum_exp)                                        # logsumexp

    # Pass 3: single weighted reduction.  Smoothed one-hot weights
    #   q_j = (1-eps) if j==target else eps/(C-1),  sum_j q_j == 1
    # so  loss_row = -sum_j q_j*(x_j - z) = z - sum_j q_j*x_j.
    off = eps / (c - 1)
    col = jax.lax.broadcasted_iota(jnp.int32, (t, c), 1)
    w = jnp.where(col == tgt, 1.0 - eps, off)                       # (T,C) f32
    wsum = jnp.sum(w * x.astype(jnp.float32), axis=1, keepdims=True)
    loss = z - wsum                                                 # (T,1) f32

    # Masked partial sums for the masked mean (module uses mean for both
    # reduction modes).  Validity of the ragged tile is folded in here.
    mask = jnp.logical_and(tgt != ignore_index, valid).astype(jnp.float32)
    total = jnp.sum(loss * mask)
    count = jnp.sum(mask)

    # Lane-dense partial tile: lane 0 = total, lane 1 = count, rest zero.
    lane = jax.lax.broadcasted_iota(jnp.int32, out_ref.shape, 2)
    out_ref[...] = (jnp.where(lane == 0, total, 0.0)
                    + jnp.where(lane == 1, count, 0.0)).astype(out_ref.dtype)


def _vmem_budget():
    """(vmem_limit_bytes, streaming byte budget for tile sizing)."""
    cap = None
    try:
        cap = getattr(pltpu.get_tpu_info(), "vmem_capacity_bytes", None)
    except Exception:
        cap = None
    if cap is None:
        cap = 128 * 1024 * 1024
    if cap <= 64 * 1024 * 1024:
        # v7x-class: only 64 MiB physical per TensorCore.
        return 48 * 1024 * 1024, 12 * 1024 * 1024
    # v5e / v6e: 128 MiB physical; raise the (16/32 MiB) scoped default.
    return 64 * 1024 * 1024, 24 * 1024 * 1024


def label_smoothing_loss(pred, target, smooth_eps=0.1, ignore_index=-100,
                         reduction="mean", tile_n=None):
    """pred: (N, C) float, target: (N,) int -> scalar float32 (masked mean)."""
    assert 0.0 < smooth_eps <= 1.0
    if reduction not in ("mean", "sum"):
        # The reference module raises for anything else.
        raise ValueError(f"unsupported reduction: {reduction}")
    # NOTE: the reference PyTorch module computes the masked *mean* for both
    # 'mean' and 'sum'; we reproduce that behavior exactly.
    n, c = pred.shape
    if c < 2:
        raise ValueError("LabelSmoothingLoss requires at least 2 classes")

    itemsize = jnp.dtype(pred.dtype).itemsize
    vmem_limit, stream_budget = _vmem_budget()

    if tile_n is None:
        # Per-row VMEM cost of the streaming pipeline:
        #   2 x pred tile (double-buffered, input dtype)
        # + ~2 (T,C) f32 temps for the in-kernel elementwise/exp passes
        # + 2 x lane-padded (tile_n,1)->(tile_n,128) int32 target buffers.
        per_row = 2 * c * itemsize + 8 * c + 2 * 128 * 4
        tile_n = stream_budget // max(per_row, 1)
        tile_n = max(8, min(8192, (tile_n // 8) * 8))
        # Don't over-grow tiny batches.
        tile_n = min(tile_n, _round_up(n, 8))
        # Ensure >=2 grid tiles so both v7x TensorCores get rows.
        if n > 8:
            tile_n = min(tile_n, max(8, _round_up(-(-n // 2), 8)))
        tile_n = max(8, tile_n)
    num_tiles = pl.cdiv(n, tile_n)

    tgt2d = target.reshape(n, 1).astype(jnp.int32)   # unpadded; validity masked in-kernel

    kernel = functools.partial(_label_smoothing_kernel,
                               eps=float(smooth_eps),
                               ignore_index=int(ignore_index),
                               n_rows=n)

    cost = pl.CostEstimate(
        flops=6 * n * c,
        transcendentals=n * c,
        bytes_accessed=n * c * itemsize + n * 4 + num_tiles * 8 * 128 * 4,
    )

    partials = pl.pallas_call(
        kernel,
        out_shape=jax.ShapeDtypeStruct((num_tiles, 8, 128), jnp.float32),
        grid=(num_tiles,),
        in_specs=[
            pl.BlockSpec((tile_n, c), lambda i: (i, 0)),
            pl.BlockSpec((tile_n, 1), lambda i: (i, 0)),
        ],
        out_specs=pl.BlockSpec((1, 8, 128), lambda i: (i, 0, 0)),
        compiler_params=pltpu.CompilerParams(
            dimension_semantics=("parallel",),
            vmem_limit_bytes=vmem_limit),
        cost_estimate=cost,
    )(pred, tgt2d)   # input dtype streams HBM->VMEM untouched; upcast in VMEM

    total = jnp.sum(partials[:, 0, 0])
    count = jnp.sum(partials[:, 0, 1])
    return total / count   # NaN iff every target == ignore_index (matches reference)


def _reference(pred, target, eps=0.1, ignore_index=-100):
    n, c = pred.shape
    pred = pred.astype(jnp.float32)
    one_hot = jax.nn.one_hot(target, c, dtype=pred.dtype)
    one_hot = one_hot * (1.0 - eps) + (1.0 - one_hot) * eps / (c - 1)
    log_prb = jax.nn.log_softmax(pred, axis=1)
    loss = -jnp.sum(one_hot * log_prb, axis=1)
    mask = (target != ignore_index)
    return jnp.sum(jnp.where(mask, loss, 0.0)) / jnp.sum(mask.astype(pred.dtype))


if __name__ == "__main__":
    key = jax.random.PRNGKey(0)

    # Case 1: small f32 batch, one ignored row (exercises ignore_index mask).
    k1, k2, key = jax.random.split(key, 3)[0], jax.random.split(key, 3)[1], jax.random.split(key, 3)[2]
    N, C = 8, 16
    pred = jax.random.normal(k1, (N, C), dtype=jnp.float32)
    target = jax.random.randint(k2, (N,), 0, C, dtype=jnp.int32)
    target = target.at[3].set(-100)
    out = jax.block_until_ready(label_smoothing_loss(pred, target))
    ref = _reference(pred, target)
    assert jnp.allclose(out, ref, rtol=1e-5, atol=1e-5), (out, ref)

    # Case 2: ragged row count (N not a multiple of tile_n) -> exercises the
    # in-kernel row-validity masking of the last tile.
    k3, k4, key = jax.random.split(key, 3)
    N2, C2 = 13, 32
    pred2 = jax.random.normal(k3, (N2, C2), dtype=jnp.float32)
    target2 = jax.random.randint(k4, (N2,), 0, C2, dtype=jnp.int32)
    target2 = target2.at[0].set(-100)
    out2 = jax.block_until_ready(label_smoothing_loss(pred2, target2))
    ref2 = _reference(pred2, target2)
    assert jnp.allclose(out2, ref2, rtol=1e-5, atol=1e-5), (out2, ref2)

    # Case 3: bf16 input streams at 2B/elem; upcast happens inside the kernel.
    k5, k6, key = jax.random.split(key, 3)
    N3, C3 = 24, 128
    pred3 = jax.random.normal(k5, (N3, C3), dtype=jnp.float32).astype(jnp.bfloat16)
    target3 = jax.random.randint(k6, (N3,), 0, C3, dtype=jnp.int32)
    out3 = jax.block_until_ready(label_smoothing_loss(pred3, target3))
    ref3 = _reference(pred3.astype(jnp.float32), target3)
    assert jnp.allclose(out3, ref3, rtol=1e-3, atol=1e-3), (out3, ref3)

    print("KERNEL_OK")
</pallas_src>

<mosaic_0001>
module attributes {stable_mosaic.version = 11 : i64} {
  func.func @_label_smoothing_kernel(%arg0: i32, %arg1: memref<8x16xf32, #tpu.memory_space<vmem>>, %arg2: memref<8x1xi32, #tpu.memory_space<vmem>>, %arg3: memref<1x8x128xf32, #tpu.memory_space<vmem>>) attributes {dimension_semantics = [#tpu.dimension_semantics<parallel>], iteration_bounds = array<i64: 1>, scalar_prefetch = 0 : i64, scratch_operands = 0 : i64, tpu.core_type = #tpu.core_type<tc>, window_params = [{transform_indices = @transform_0, window_bounds = array<i64: 8, 16>}, {transform_indices = @transform_1, window_bounds = array<i64: 8, 1>}, {transform_indices = @transform_2, window_bounds = array<i64: 1, 8, 128>}]} {
    %c8_i32 = arith.constant 8 : i32
    %0 = arith.muli %arg0, %c8_i32 : i32
    %1 = tpu.iota {dimensions = array<i32: 0>} : vector<8x1xi32>
    %2 = vector.broadcast %0 : i32 to vector<8x1xi32>
    %3 = arith.addi %2, %1 : vector<8x1xi32>
    %c8_i32_0 = arith.constant 8 : i32
    %4 = vector.broadcast %c8_i32_0 : i32 to vector<8x1xi32>
    %5 = arith.cmpi slt, %3, %4 : vector<8x1xi32>
    %c0 = arith.constant 0 : index
    %c0_1 = arith.constant 0 : index
    %6 = vector.load %arg1[%c0, %c0_1] : memref<8x16xf32, #tpu.memory_space<vmem>>, vector<8x16xf32>
    %cst = arith.constant 0.000000e+00 : f32
    %7 = vector.broadcast %cst : f32 to vector<8x16xf32>
    %8 = vector.shape_cast %5 : vector<8x1xi1> to vector<8x1xi1>
    %9 = vector.broadcast %8 : vector<8x1xi1> to vector<8x16xi1>
    %10 = arith.select %9, %6, %7 : vector<8x16xi1>, vector<8x16xf32>
    %c0_2 = arith.constant 0 : index
    %c0_3 = arith.constant 0 : index
    %11 = vector.load %arg2[%c0_2, %c0_3] : memref<8x1xi32, #tpu.memory_space<vmem>>, vector<8x1xi32>
    %cst_4 = arith.constant dense<0xFF800000> : vector<8xf32>
    %12 = vector.multi_reduction <maximumf>, %10, %cst_4 [1] : vector<8x16xf32> to vector<8xf32>
    %13 = vector.shape_cast %12 : vector<8xf32> to vector<8x1xf32>
    %14 = vector.broadcast %13 : vector<8x1xf32> to vector<8x16xf32>
    %15 = arith.subf %10, %14 : vector<8x16xf32>
    %16 = math.exp %15 : vector<8x16xf32>
    %cst_5 = arith.constant dense<0.000000e+00> : vector<8xf32>
    %17 = vector.multi_reduction <add>, %16, %cst_5 [1] : vector<8x16xf32> to vector<8xf32>
    %18 = vector.shape_cast %17 : vector<8xf32> to vector<8x1xf32>
    %19 = math.log %18 : vector<8x1xf32>
    %20 = arith.addf %13, %19 : vector<8x1xf32>
    %21 = tpu.iota {dimensions = array<i32: 1>} : vector<8x16xi32>
    %22 = vector.broadcast %11 : vector<8x1xi32> to vector<8x16xi32>
    %23 = arith.cmpi eq, %21, %22 : vector<8x16xi32>
    %cst_6 = arith.constant 0.899999976 : f32
    %cst_7 = arith.constant 0.00666666683 : f32
    %24 = vector.broadcast %cst_6 : f32 to vector<8x16xf32>
    %25 = vector.broadcast %cst_7 : f32 to vector<8x16xf32>
    %26 = arith.select %23, %24, %25 : vector<8x16xi1>, vector<8x16xf32>
    %27 = arith.mulf %26, %10 : vector<8x16xf32>
    %cst_8 = arith.constant dense<0.000000e+00> : vector<8xf32>
    %28 = vector.multi_reduction <add>, %27, %cst_8 [1] : vector<8x16xf32> to vector<8xf32>
    %29 = vector.shape_cast %28 : vector<8xf32> to vector<8x1xf32>
    %30 = arith.subf %20, %29 : vector<8x1xf32>
    %c-100_i32 = arith.constant -100 : i32
    %31 = vector.broadcast %c-100_i32 : i32 to vector<8x1xi32>
    %32 = arith.cmpi ne, %11, %31 : vector<8x1xi32>
    %33 = arith.andi %32, %5 : vector<8x1xi1>
    %34 = arith.extui %33 : vector<8x1xi1> to vector<8x1xi32>
    %35 = arith.sitofp %34 : vector<8x1xi32> to vector<8x1xf32>
    %36 = arith.mulf %30, %35 : vector<8x1xf32>
    %37 = vector.shape_cast %36 : vector<8x1xf32> to vector<1x8x1xf32>
    %cst_9 = arith.constant dense<0.000000e+00> : vector<1xf32>
    %38 = vector.multi_reduction <add>, %37, %cst_9 [1, 2] : vector<1x8x1xf32> to vector<1xf32>
    %39 = vector.shape_cast %38 : vector<1xf32> to vector<1x1x1xf32>
    %40 = vector.extract %39[0, 0, 0] : f32 from vector<1x1x1xf32>
    %41 = vector.shape_cast %35 : vector<8x1xf32> to vector<1x8x1xf32>
    %cst_10 = arith.constant dense<0.000000e+00> : vector<1xf32>
    %42 = vector.multi_reduction <add>, %41, %cst_10 [1, 2] : vector<1x8x1xf32> to vector<1xf32>
    %43 = vector.shape_cast %42 : vector<1xf32> to vector<1x1x1xf32>
    %44 = vector.extract %43[0, 0, 0] : f32 from vector<1x1x1xf32>
    %45 = tpu.iota {dimensions = array<i32: 2>} : vector<1x8x128xi32>
    %c0_i32 = arith.constant 0 : i32
    %46 = vector.broadcast %c0_i32 : i32 to vector<1x8x128xi32>
    %47 = arith.cmpi eq, %45, %46 : vector<1x8x128xi32>
    %cst_11 = arith.constant 0.000000e+00 : f32
    %48 = vector.broadcast %40 : f32 to vector<1x8x128xf32>
    %49 = vector.broadcast %cst_11 : f32 to vector<1x8x128xf32>
    %50 = arith.select %47, %48, %49 : vector<1x8x128xi1>, vector<1x8x128xf32>
    %c1_i32 = arith.constant 1 : i32
    %51 = vector.broadcast %c1_i32 : i32 to vector<1x8x128xi32>
    %52 = arith.cmpi eq, %45, %51 : vector<1x8x128xi32>
    %cst_12 = arith.constant 0.000000e+00 : f32
    %53 = vector.broadcast %44 : f32 to vector<1x8x128xf32>
    %54 = vector.broadcast %cst_12 : f32 to vector<1x8x128xf32>
    %55 = arith.select %52, %53, %54 : vector<1x8x128xi1>, vector<1x8x128xf32>
    %56 = arith.addf %50, %55 : vector<1x8x128xf32>
    %c0_13 = arith.constant 0 : index
    %c0_14 = arith.constant 0 : index
    %c0_15 = arith.constant 0 : index
    %57 = vector.load %arg3[%c0_13, %c0_14, %c0_15] : memref<1x8x128xf32, #tpu.memory_space<vmem>>, vector<1x8x128xf32>
    tpu.vector_store %arg3[%c0_13, %c0_14, %c0_15], %56 {strides = array<i32>} : memref<1x8x128xf32, #tpu.memory_space<vmem>>, vector<1x8x128xf32>,
    return
  }
  func.func @transform_0(%arg0: i32) -> (i32, i32) {
    %c0_i32 = arith.constant 0 : i32
    %c0_i32_0 = arith.constant 0 : i32
    return %arg0, %c0_i32 : i32, i32
  }
  func.func @transform_1(%arg0: i32) -> (i32, i32) {
    %c0_i32 = arith.constant 0 : i32
    %c0_i32_0 = arith.constant 0 : i32
    return %arg0, %c0_i32 : i32, i32
  }
  func.func @transform_2(%arg0: i32) -> (i32, i32, i32) {
    %c0_i32 = arith.constant 0 : i32
    %c0_i32_0 = arith.constant 0 : i32
    %c0_i32_1 = arith.constant 0 : i32
    return %arg0, %c0_i32, %c0_i32_0 : i32, i32, i32
  }
}

</mosaic_0001>

<bundles_post_ra>
// kernel: tpu_custom_call.1
= control target key start
LH: loop header
LB: loop body
LE: loop exit
PB: predicated region body
PF: predicated region fallthrough
CT: control target
= control target key end

     0   :  { %vm23_vm0 = vcmask 130048   ;;  %s169_s0 = inlined_call_operand.vmem [shape: f32[8,16], index: 0, kind: input, shape index: {}]   ;;  %s170_s1 = inlined_call_operand.vmem [shape: s32[8,1], index: 1, kind: input, shape index: {}]   ;;  %s171_s2 = inlined_call_operand.hbm [shape: f32[1,8,128], index: 2, kind: output, shape index: {}]  }
   0x1   :  { %v18_v0 = vld [vmem:[%s169_s0] sm:$0xff] }
   0x2   :  { %7 = vsyncpa [#allocation3], 0  ;;  %v24_v1 = vsel %vm23_vm0, %v18_v0, -inf  ;;  %v138_v2 = vmov 0   ;;  %v22_v3 = vld [vmem:[%s170_s1] sm:$0xff]  ;;  %v36_v9 = vlaneseq  ;;  %v140_v21 = vmov 0.0  }
   0x3   :  { %107 = vset.pattern.permute.xlu0 %v138_v2  ;;  %v139_v12 = vmov 0.006666667   ;;  %vm48_vm2 = vcmp.ne.s32.totalorder %v22_v3, 4294967196  ;;  %vm53_vm3 = vcmask 7168   ;;  %s141_s1 = smov [#allocation2]   ;;  %s89_s17 = sshll.u32 %s171_s2, 4  ;;  %s90_s17 = int_to_ptr.hbm [resolvable:$true] %s89_s17 }
   0x4   :  { %25 = vmax.xlane.f32.xlu0 %v24_v1  ;;  %v37_v10 = vand.u32 127, %v36_v9  ;;  %v98_v22 = vsel %vm48_vm2, 1.0, %v140_v21  ;;  %s87_s13 = sshll.u32 %s141_s1, 4  ;;  %s88_s13 = int_to_ptr.vmem [resolvable:$true] %s87_s13 }
   0x5   :  { %v64_v26 = vsel %vm53_vm3, %v98_v22, 0.0 }
   0x6   :  { %vm74_vm4 = vcmp.eq.s32.totalorder %v37_v10, 0  ;;  %vm77_vm5 = vcmp.eq.s32.totalorder %v37_v10, 1 }
  0x18   :  { %39 = vperm.xlu0 %107, %v22_v3  }
  0x77   :  { %v26_v4 = vpop.xlane.xlu0 %25 }
  0x78   :  { %v27_v5 = vsub.f32 %v18_v0, %v26_v4 }
  0x7a   :  { %v28_v6 = vmul.f32 1.442695, %v27_v5 }
  0x7c   :  { %108 = vpow2.f32 %v28_v6 }
  0x82   :  { %v109_v7 = vpop.eup %108 }
  0x83   :  { %v30_v8 = vsel %vm23_vm0, %v109_v7, 0.0 }
  0x84   :  { %31 = vadd.xlane.f32.xlu1 %v30_v8 }
  0x8a   :  { %v40_v11 = vpop.permute.xlu0 %39 }
  0x8b   :  { %vm41_vm1 = vcmp.eq.s32.totalorder %v37_v10, %v40_v11 }
  0x8c   :  { %v42_v13 = vsel %vm41_vm1, 0.9, %v139_v12 }
  0x8d   :  { %v43_v14 = vmul.f32 %v42_v13, %v18_v0 }
  0x8f   :  { %v44_v15 = vsel %vm23_vm0, %v43_v14, 0.0 }
  0x90   :  { %45 = vadd.xlane.f32.xlu1 %v44_v15 }
  0xf7   :  { %v32_v16 = vpop.xlane.xlu1 %31 }
  0xf8   :  { %110 = vlog2.f32 %v32_v16 }
  0xfe   :  { %v111_v17 = vpop.eup %110 }
  0xff   :  { %v34_v18 = vmul.f32 0.6931472, %v111_v17 }
 0x101   :  { %v35_v19 = vadd.f32 %v34_v18, %v26_v4 }
 0x103   :  { %v46_v20 = vpop.xlane.xlu1 %45 }
 0x104   :  { %v47_v23 = vsub.f32 %v35_v19, %v46_v20 }
 0x106   :  { %v52_v24 = vmul.f32 %v98_v22, %v47_v23 }
 0x108   :  { %v54_v25 = vsel %vm53_vm3, %v52_v24, 0.0 }
 0x109   :  { %55 = vadd.xlane.f32.xlu2 %v54_v25 }
 0x111   :  { %65 = vadd.xlane.f32.xlu2 %v64_v26 }
 0x17c   :  { %v56_v27 = vpop.xlane.xlu2 %55 }
 0x17d   :  { %v57_v28 = vrot.slane %v56_v27, 4 }
 0x17f   :  { %v58_v29 = vadd.f32 %v57_v28, %v56_v27 }
 0x181   :  { %v59_v30 = vrot.slane %v58_v29, 2 }
 0x183   :  { %v60_v31 = vadd.f32 %v59_v30, %v58_v29 }
 0x184   :  { %v66_v32 = vpop.xlane.xlu2 %65 }
 0x185   :  { %v67_v33 = vrot.slane %v66_v32, 4  ;;  %v61_v34 = vrot.slane %v60_v31, 1 }
 0x187   :  { %v68_v35 = vadd.f32 %v67_v33, %v66_v32  ;;  %v62_v36 = vadd.f32 %v61_v34, %v60_v31 }
 0x189   :  { %v69_v37 = vrot.slane %v68_v35, 2  ;;  %99 = vpush %v62_v36 }
 0x18b   :  { %v70_v38 = vadd.f32 %v69_v37, %v68_v35 }
 0x18d   :  { %v71_v39 = vrot.slane %v70_v38, 1 }
 0x18f   :  { %v72_v40 = vadd.f32 %v71_v39, %v70_v38 }
 0x191   :  { %101 = vpush %v72_v40 }
 0x1ba   :  { %s100_s0 = spop %99 }
 0x1bb   :  { %v75_v41 = vstv %s100_s0 }
 0x1bc   :  { %v76_v43 = vsel %vm74_vm4, %v75_v41, 0.0 }
 0x1c2   :  { %s102_s14 = spop %101 }
 0x1c3   :  { %v78_v42 = vstv %s102_s14 }
 0x1c4   :  { %v79_v44 = vsel %vm77_vm5, %v78_v42, 0.0 }
 0x1c5   :  { %v80_v45 = vadd.f32 %v79_v44, %v76_v43 }
 0x1c7   :  { %81 = vst [vmem:[#allocation2] sm:$0xff] %v80_v45 }
 0x1c8   :  { %92 = dma.vmem_to_hbm [thread:$0]  %s88_s13, 128, %s90_s17, [#allocation3]  }
 0x1c9   :  { %136 = dma.done.wait [#allocation3], 128  }
 0x1ca   :  { %137 = vsyncadd [#allocation3], 4294967168 }
 0x1cb   :  { %97 = vsyncpa [#allocation3], 1 }

</bundles_post_ra>
